<compile_context>
chip_gen: v5e
topology: v5e:2x2
jax: 0.10.0
libtpu: 0.0.40
codegen_flags: <defaults>
</compile_context>

<pallas_src>
import jax
import jax.numpy as jnp
from jax.experimental import pallas as pl
from jax.experimental.pallas import tpu as pltpu


def _make_mlp_kernel(n_layers: int):
    """Fused MLP kernel for a fixed number of Linear layers."""

    def kernel(*refs):
        x_ref = refs[0]            # [Btile, d_in]   batch-major (as stored in HBM)
        o_ref = refs[-1]           # [d_out, Btile]  feature-major (lane-dense)
        p = refs[1:-1]             # (W0, b0, ..., W_{L-1}, b_{L-1}); W: [out, in]

        x = x_ref[...]             # already f32
        h = None
        for l in range(n_layers):
            w = p[2 * l][...]          # [out_l, in_l]  (PyTorch layout, untouched)
            b = p[2 * l + 1][...]      # [out_l, 1]
            if l == 0:
                # w @ x.T: contract d_in of both operands -> [out_0, Btile].
                h = jax.lax.dot_general(
                    w, x, (((1,), (1,)), ((), ())),
                    preferred_element_type=jnp.float32) + b
            else:
                h = jnp.dot(w, h, preferred_element_type=jnp.float32) + b
            if l < n_layers - 1:       # activation on all but the last layer
                h = jnp.maximum(h, 0.0)     # nn.ReLU
        o_ref[...] = h.astype(o_ref.dtype)

    return kernel


def pack_mlp_params(params):
    """Pre-pack PyTorch-convention params once (hoisted out of the hot path).

    params: list of (W, b) with W: [out, in], b: [out].
    Returns list of (W [out, in] f32, b [out, 1] f32) jnp arrays.
    """
    packed = []
    for W, b in params:
        packed.append((jnp.asarray(W, jnp.float32),
                       jnp.asarray(b, jnp.float32).reshape(-1, 1)))
    return packed


def mlp_forward(x, packed_params, *, squeeze_output=False, batch_tile=512):
    """Run the fused MLP Pallas kernel.

    x:             [B, dims[0]] float32 (PyTorch convention)
    packed_params: output of pack_mlp_params
    """
    B, d_in = x.shape
    n_layers = len(packed_params)
    d_out = packed_params[-1][0].shape[0]

    # Lane-aligned batch tile, never larger than the 128-rounded batch.
    batch_tile = max(128, (batch_tile // 128) * 128)
    b_round = ((B + 127) // 128) * 128
    batch_tile = min(batch_tile, b_round)
    grid_n = pl.cdiv(B, batch_tile)
    B_pad = grid_n * batch_tile

    # Zero-pad the batch (rows); padded rows compute garbage and are sliced
    # off below -- cheaper and simpler than an in-kernel masked tail.
    x_pad = x if B_pad == B else jnp.pad(x, ((0, B_pad - B), (0, 0)))

    args = [x_pad]
    in_specs = [pl.BlockSpec((batch_tile, d_in), lambda i: (i, 0))]
    for (W, b) in packed_params:
        args += [W, b]
        in_specs += [
            pl.BlockSpec(W.shape, lambda i: (0, 0)),   # constant block -> fetched once
            pl.BlockSpec(b.shape, lambda i: (0, 0)),
        ]

    out = pl.pallas_call(
        _make_mlp_kernel(n_layers),
        out_shape=jax.ShapeDtypeStruct((d_out, B_pad), jnp.float32),
        grid=(grid_n,),
        in_specs=in_specs,
        out_specs=pl.BlockSpec((d_out, batch_tile), lambda i: (0, i)),
        compiler_params=pltpu.CompilerParams(
            dimension_semantics=("parallel",)
        ),
    )(*args)

    if squeeze_output:
        return out[0, :B]                # Squeeze(-1): [B]
    return out[:, :B].T                  # back to [B, d_out]


def init_mlp_params(key, dims):
    """Deterministic init mimicking PyTorch nn.Linear default:
    U(-1/sqrt(fan_in), 1/sqrt(fan_in)) for both weight and bias."""
    params = []
    for i in range(len(dims) - 1):
        fan_in, fan_out = dims[i], dims[i + 1]
        key, kw, kb = jax.random.split(key, 3)
        bound = 1.0 / jnp.sqrt(float(fan_in))
        W = jax.random.uniform(kw, (fan_out, fan_in), jnp.float32, -bound, bound)
        b = jax.random.uniform(kb, (fan_out,), jnp.float32, -bound, bound)
        params.append((W, b))
    return params


def mlp_reference(x, params, squeeze_output=False):
    """Pure-JAX reference of the PyTorch MLP forward."""
    h = x
    n = len(params)
    for l, (W, b) in enumerate(params):
        h = h @ W.T + b
        if l < n - 1:
            h = jnp.maximum(h, 0.0)
    if squeeze_output:
        h = jnp.squeeze(h, axis=-1)
    return h


if __name__ == "__main__":
    # MLP(dims=(16, 32, 32, 1), activation_fn=nn.ReLU, squeeze_output=True)
    dims = (16, 32, 32, 1)
    squeeze_output = True
    batch = 256           # tile 128 -> 2 grid steps (exercises the pipeline / both v7x TCs)

    key = jax.random.PRNGKey(0)
    key, kx = jax.random.split(key)
    x = jax.random.normal(kx, (batch, dims[0]), dtype=jnp.float32)
    params = init_mlp_params(key, dims)
    packed = pack_mlp_params(params)     # pre-pack once, reused across calls

    out = mlp_forward(x, packed, squeeze_output=squeeze_output, batch_tile=128)
    out = jax.block_until_ready(out)

    ref = mlp_reference(x, params, squeeze_output=squeeze_output)
    assert out.shape == ref.shape == (batch,)
    assert jnp.allclose(out, ref, atol=1e-4, rtol=1e-4)

    # Ragged-batch path: exercises cdiv grid + zero-padded tail.
    x2 = x[:100]
    out2 = jax.block_until_ready(
        mlp_forward(x2, packed, squeeze_output=True))
    ref2 = mlp_reference(x2, params, squeeze_output=True)
    assert out2.shape == ref2.shape == (100,)
    assert jnp.allclose(out2, ref2, atol=1e-4, rtol=1e-4)

    print("KERNEL_OK")
</pallas_src>

<mosaic_0001>
module attributes {stable_mosaic.version = 11 : i64} {
  func.func @kernel(%arg0: i32, %arg1: memref<128x16xf32, #tpu.memory_space<vmem>>, %arg2: memref<32x16xf32, #tpu.memory_space<vmem>>, %arg3: memref<32x1xf32, #tpu.memory_space<vmem>>, %arg4: memref<32x32xf32, #tpu.memory_space<vmem>>, %arg5: memref<32x1xf32, #tpu.memory_space<vmem>>, %arg6: memref<1x32xf32, #tpu.memory_space<vmem>>, %arg7: memref<1x1xf32, #tpu.memory_space<vmem>>, %arg8: memref<1x128xf32, #tpu.memory_space<vmem>>) attributes {dimension_semantics = [#tpu.dimension_semantics<parallel>], iteration_bounds = array<i64: 2>, scalar_prefetch = 0 : i64, scratch_operands = 0 : i64, tpu.core_type = #tpu.core_type<tc>, window_params = [{transform_indices = @transform_0, window_bounds = array<i64: 128, 16>}, {pipeline_mode = #tpu.pipeline_mode<synchronous>, transform_indices = @transform_1, window_bounds = array<i64: 32, 16>}, {pipeline_mode = #tpu.pipeline_mode<synchronous>, transform_indices = @transform_2, window_bounds = array<i64: 32, 1>}, {pipeline_mode = #tpu.pipeline_mode<synchronous>, transform_indices = @transform_3, window_bounds = array<i64: 32, 32>}, {pipeline_mode = #tpu.pipeline_mode<synchronous>, transform_indices = @transform_4, window_bounds = array<i64: 32, 1>}, {pipeline_mode = #tpu.pipeline_mode<synchronous>, transform_indices = @transform_5, window_bounds = array<i64: 1, 32>}, {pipeline_mode = #tpu.pipeline_mode<synchronous>, transform_indices = @transform_6, window_bounds = array<i64: 1, 1>}, {transform_indices = @transform_7, window_bounds = array<i64: 1, 128>}]} {
    %c0 = arith.constant 0 : index
    %c0_0 = arith.constant 0 : index
    %0 = vector.load %arg1[%c0, %c0_0] : memref<128x16xf32, #tpu.memory_space<vmem>>, vector<128x16xf32>
    %c0_1 = arith.constant 0 : index
    %c0_2 = arith.constant 0 : index
    %1 = vector.load %arg2[%c0_1, %c0_2] : memref<32x16xf32, #tpu.memory_space<vmem>>, vector<32x16xf32>
    %c0_3 = arith.constant 0 : index
    %c0_4 = arith.constant 0 : index
    %2 = vector.load %arg3[%c0_3, %c0_4] : memref<32x1xf32, #tpu.memory_space<vmem>>, vector<32x1xf32>
    %cst = arith.constant dense<0.000000e+00> : vector<32x128xf32>
    %3 = tpu.matmul %1, %0, %cst {dimension_numbers = #tpu.dot_dimension_numbers<[1], [1], [0], [0], [0, 0, 1, 0], [], []>} : vector<32x16xf32>, vector<128x16xf32>, vector<32x128xf32> -> vector<32x128xf32>
    %4 = vector.broadcast %2 : vector<32x1xf32> to vector<32x128xf32>
    %5 = arith.addf %3, %4 : vector<32x128xf32>
    %cst_5 = arith.constant 0.000000e+00 : f32
    %6 = vector.broadcast %cst_5 : f32 to vector<32x128xf32>
    %7 = arith.maximumf %5, %6 : vector<32x128xf32>
    %c0_6 = arith.constant 0 : index
    %c0_7 = arith.constant 0 : index
    %8 = vector.load %arg4[%c0_6, %c0_7] : memref<32x32xf32, #tpu.memory_space<vmem>>, vector<32x32xf32>
    %c0_8 = arith.constant 0 : index
    %c0_9 = arith.constant 0 : index
    %9 = vector.load %arg5[%c0_8, %c0_9] : memref<32x1xf32, #tpu.memory_space<vmem>>, vector<32x1xf32>
    %cst_10 = arith.constant dense<0.000000e+00> : vector<32x128xf32>
    %10 = tpu.matmul %8, %7, %cst_10 {dimension_numbers = #tpu.dot_dimension_numbers<[1], [0], [0], [1], [0, 0, 1, 1], [], []>} : vector<32x32xf32>, vector<32x128xf32>, vector<32x128xf32> -> vector<32x128xf32>
    %11 = vector.broadcast %9 : vector<32x1xf32> to vector<32x128xf32>
    %12 = arith.addf %10, %11 : vector<32x128xf32>
    %cst_11 = arith.constant 0.000000e+00 : f32
    %13 = vector.broadcast %cst_11 : f32 to vector<32x128xf32>
    %14 = arith.maximumf %12, %13 : vector<32x128xf32>
    %c0_12 = arith.constant 0 : index
    %c0_13 = arith.constant 0 : index
    %15 = vector.load %arg6[%c0_12, %c0_13] : memref<1x32xf32, #tpu.memory_space<vmem>>, vector<1x32xf32>
    %c0_14 = arith.constant 0 : index
    %c0_15 = arith.constant 0 : index
    %16 = vector.load %arg7[%c0_14, %c0_15] : memref<1x1xf32, #tpu.memory_space<vmem>>, vector<1x1xf32>
    %cst_16 = arith.constant dense<0.000000e+00> : vector<1x128xf32>
    %17 = tpu.matmul %15, %14, %cst_16 {dimension_numbers = #tpu.dot_dimension_numbers<[1], [0], [0], [1], [0, 0, 1, 1], [], []>} : vector<1x32xf32>, vector<32x128xf32>, vector<1x128xf32> -> vector<1x128xf32>
    %18 = vector.broadcast %16 : vector<1x1xf32> to vector<1x128xf32>
    %19 = arith.addf %17, %18 : vector<1x128xf32>
    %c0_17 = arith.constant 0 : index
    %c0_18 = arith.constant 0 : index
    %20 = vector.load %arg8[%c0_17, %c0_18] : memref<1x128xf32, #tpu.memory_space<vmem>>, vector<1x128xf32>
    tpu.vector_store %arg8[%c0_17, %c0_18], %19 {strides = array<i32>} : memref<1x128xf32, #tpu.memory_space<vmem>>, vector<1x128xf32>,
    return
  }
  func.func @transform_0(%arg0: i32) -> (i32, i32) {
    %c0_i32 = arith.constant 0 : i32
    %c0_i32_0 = arith.constant 0 : i32
    return %arg0, %c0_i32 : i32, i32
  }
  func.func @transform_1(%arg0: i32) -> (i32, i32) {
    %c0_i32 = arith.constant 0 : i32
    %c0_i32_0 = arith.constant 0 : i32
    %c0_i32_1 = arith.constant 0 : i32
    return %c0_i32, %c0_i32_0 : i32, i32
  }
  func.func @transform_2(%arg0: i32) -> (i32, i32) {
    %c0_i32 = arith.constant 0 : i32
    %c0_i32_0 = arith.constant 0 : i32
    %c0_i32_1 = arith.constant 0 : i32
    return %c0_i32, %c0_i32_0 : i32, i32
  }
  func.func @transform_3(%arg0: i32) -> (i32, i32) {
    %c0_i32 = arith.constant 0 : i32
    %c0_i32_0 = arith.constant 0 : i32
    %c0_i32_1 = arith.constant 0 : i32
    return %c0_i32, %c0_i32_0 : i32, i32
  }
  func.func @transform_4(%arg0: i32) -> (i32, i32) {
    %c0_i32 = arith.constant 0 : i32
    %c0_i32_0 = arith.constant 0 : i32
    %c0_i32_1 = arith.constant 0 : i32
    return %c0_i32, %c0_i32_0 : i32, i32
  }
  func.func @transform_5(%arg0: i32) -> (i32, i32) {
    %c0_i32 = arith.constant 0 : i32
    %c0_i32_0 = arith.constant 0 : i32
    %c0_i32_1 = arith.constant 0 : i32
    return %c0_i32, %c0_i32_0 : i32, i32
  }
  func.func @transform_6(%arg0: i32) -> (i32, i32) {
    %c0_i32 = arith.constant 0 : i32
    %c0_i32_0 = arith.constant 0 : i32
    %c0_i32_1 = arith.constant 0 : i32
    return %c0_i32, %c0_i32_0 : i32, i32
  }
  func.func @transform_7(%arg0: i32) -> (i32, i32) {
    %c0_i32 = arith.constant 0 : i32
    %c0_i32_0 = arith.constant 0 : i32
    return %c0_i32, %arg0 : i32, i32
  }
}

</mosaic_0001>

<bundles_post_ra>
// kernel: tpu_custom_call.1
= control target key start
LH: loop header
LB: loop body
LE: loop exit
PB: predicated region body
PF: predicated region fallthrough
CT: control target
= control target key end

     0   :  { %s986_s0 = inlined_call_operand.vmem [shape: f32[256,16], index: 0, kind: input, shape index: {}]   ;;  %s987_s1 = inlined_call_operand.vmem [shape: f32[32,16], index: 1, kind: input, shape index: {}]   ;;  %s988_s2 = inlined_call_operand.vmem [shape: f32[32,1], index: 2, kind: input, shape index: {}]   ;;  %s989_s3 = inlined_call_operand.vmem [shape: f32[32,32], index: 3, kind: input, shape index: {}]   ;;  %s990_s4 = inlined_call_operand.vmem [shape: f32[32,1], index: 4, kind: input, shape index: {}]   ;;  %s991_s5 = inlined_call_operand.vmem [shape: f32[1,32], index: 5, kind: input, shape index: {}]   ;;  %s992_s6 = inlined_call_operand.<no memory space> [shape: f32[1,1], index: 6, kind: input, shape index: {}]   ;;  %s993_s7 = inlined_call_operand.hbm [shape: f32[1,256], index: 7, kind: output, shape index: {}]  }
   0x1   :  { %v12_v0 = vstv %s992_s6 }
   0x2   :  { %13 = vst [vmem:[#allocation2] sm:$0x1] %v12_v0 }
   0x3   :  { %14 = vsyncpa [#allocation4], 0 }
   0x4   :  { %16 = vsyncpa [#allocation4 + $0x1], 0  ;;  %s792_s26 = smov 0   ;;  %s794_s27 = smov 0  }
   0x5   :  { %s796_s28 = smov 0   ;;  %s798_s29 = smov 0  }
   0x6 LB: > { %s813_s6 = sadd.s32 4294967295, %s746_s29   ;;  %s592_s30 = sadd.s32 4294967294, %s746_s29   ;;  %s746_s29 = sphi %s798_s29, %s999_s29   ;;  %s742_s28 = sphi %s796_s28, %s998_s28   ;;  %s738_s27 = sphi %s794_s27, %s997_s27   ;;  %s734_s26 = sphi %s792_s26, %s996_s26  }
   0x7   : > { %s817_s8 = sadd.s32 1, %s746_s29   ;;  %s181_s9 = sadd.s32 1, %s742_s28 }
   0x8   : > { %s178_s10 = ssub.s32 %s746_s29, %s817_s8  ;;  %p191_p0 = scmp.ne.s32.totalorder %s742_s28, %s738_s27 }
   0x9   : > { %p179_p1 = scmp.eq.s32.totalorder %s178_s10, 0  ;;  %p192_p2 = scmp.eq.s32.totalorder %s813_s6, 1 }
   0xa   : > { %p197_p3 = scmp.ne.s32.totalorder %s738_s27, %s734_s26  ;;  %p198_p4 = scmp.eq.s32.totalorder %s592_s30, 1 }
   0xb   : > { %s828_s11 = scalar_select %p179_p1, %s742_s28, %s181_s9  }
   0xc   : > { %p830_p5 = por %p192_p2, %p191_p0  ;;  %p834_p6 = por %p198_p4, %p197_p3 }
   0xd   : > { %p595_p7 = scmp.ge.s32.totalorder %s746_s29, 1  ;;  %p243_p8 = scmp.lt.s32.totalorder %s746_s29, 3 }
   0xf   : > { %p244_p9 = pnand %p595_p7, %p243_p8 }
  0x10   : > { %s596_s14 = sshll.u32 (!%p244_p9), %s813_s6, 4  ;;  %s272_s23 = sand.u32 (!%p244_p9), 1, %s738_s27  }
  0x11   : > { %247 = sbr.rel (%p244_p9) target bundleno = 546 (0x222), region = 48  ;;  %p275_p10 = scmp.lt.s32.totalorder (!%p244_p9), %s596_s14, 31 }
  0x12   : > { %s533_s30 = scalar_lea.hbm (!%p244_p9), %s993_s7, %s813_s6  ;;  %s273_s9 = scalar_lea.vmem (!%p244_p9), [#allocation3], %s272_s23 }
  0x13   : > { %s535_s10 = sshll.u32 (!%p244_p9), %s273_s9, 4  ;;  %s704_s20 = scalar_lea.hbm (!%p244_p9), %s993_s7, 2  ;;  %s536_s10 = int_to_ptr.vmem [resolvable:$true] %s535_s10 }
  0x16   : > { %s1001_s14 = smov (!%p275_p10, %s596_s14), 31  ;;  %vm324_vm0 = vcmask 130048   ;;  %v303_v12 = vld [vmem:[%s988_s2 + $0x18] sm:$0xff]  ;;  %v301_v13 = vld [vmem:[%s988_s2 + $0x8] sm:$0xff]  ;;  %v748_v15 = vmov 0   ;;  %v302_v17 = vld [vmem:[%s988_s2 + $0x10] sm:$0xff] }
  0x17   : > { %s597_s15 = sshll.u32 %s1001_s14, 3  ;;  %681 = vset.pattern.permute.xlu0 %v748_v15  ;;  %682 = vset.pattern.permute.xlu1 %v748_v15  ;;  %v300_v18 = vld [vmem:[%s988_s2] sm:$0xff]  ;;  %v423_v21 = vld [vmem:[%s990_s4 + $0x8] sm:$0xff]  ;;  %v298_v26 = vld [vmem:[%s987_s1 + $0x10] sm:$0xff]  ;;  %vm446_vm1 = vcmask 261120   ;;  %s537_s14 = sshll.u32 %s533_s30, 4  ;;  %s538_s14 = int_to_ptr.hbm [resolvable:$true] %s537_s14 }
  0x18   : > { %s844_s18 = scalar_lea.vmem %s986_s0, %s597_s15  ;;  %321 = vperm.xlu0 %681, %v303_v12   ;;  %311 = vperm.xlu1 %682, %v301_v13   ;;  %v422_v22 = vld [vmem:[%s990_s4] sm:$0xff]  ;;  %v297_v24 = vld [vmem:[%s987_s1 + $0x8] sm:$0xff]  ;;  %v299_v27 = vld [vmem:[%s987_s1 + $0x18] sm:$0xff]  ;;  %s525_s15 = scalar_lea.sflag [#allocation4], %s272_s23 }
  0x19   : > { %v295_v1 = vld [vmem:[%s844_s18 + $0x78] sm:$0xff]  ;;  %v294_v2 = vld [vmem:[%s844_s18 + $0x70] sm:$0xff]  ;;  %v293_v3 = vld [vmem:[%s844_s18 + $0x68] sm:$0xff]  ;;  %683 = vset.pattern.permute.xlu2 %v748_v15  ;;  %s698_s16 = sshra.s32 %s538_s14, 4  ;;  %s699_s16 = int_to_ptr.hbm [resolvable:$true] %s698_s16 }
  0x1a   : > { %625 = vmatpush.xpose.msk.msra.mxu3 %vm324_vm0, %v295_v1  ;;  %598 = vmatpush.xpose.msk.msra.mxu0 %vm324_vm0, %v295_v1  ;;  %v292_v4 = vld [vmem:[%s844_s18 + $0x60] sm:$0xff]  ;;  %v291_v5 = vld [vmem:[%s844_s18 + $0x58] sm:$0xff]  ;;  %v290_v6 = vld [vmem:[%s844_s18 + $0x50] sm:$0xff]  ;;  %s700_s17 = scalar_lea.hbm %s699_s16, 1  ;;  %p705_p0 = scmp.lt.s32.totalorder %s699_s16, %s993_s7 }
  0x1b   : > { %v289_v7 = vld [vmem:[%s844_s18 + $0x48] sm:$0xff]  ;;  %v288_v8 = vld [vmem:[%s844_s18 + $0x40] sm:$0xff]  ;;  %v287_v9 = vld [vmem:[%s844_s18 + $0x38] sm:$0xff]  ;;  %p701_p11 = scmp.ne.s32.totalorder %s699_s16, %s700_s17  ;;  %p706_p1 = scmp.lt.s32.totalorder %s704_s20, %s700_s17 }
  0x1c   : > { %v286_v10 = vld [vmem:[%s844_s18 + $0x30] sm:$0xff]  ;;  %v285_v11 = vld [vmem:[%s844_s18 + $0x28] sm:$0xff]  ;;  %v284_v14 = vld [vmem:[%s844_s18 + $0x20] sm:$0xff] }
  0x1d   : > { %v283_v16 = vld [vmem:[%s844_s18 + $0x18] sm:$0xff]  ;;  %v282_v19 = vld [vmem:[%s844_s18 + $0x10] sm:$0xff]  ;;  %v281_v20 = vld [vmem:[%s844_s18 + $0x8] sm:$0xff]  ;;  %p702_p12 = pnand %p701_p11, %p830_p5  ;;  %p707_p2 = por %p706_p1, %p705_p0 }
  0x1e   : > { %626 = vmatpush.xpose.msk.msra.mxu3 %vm324_vm0, %v294_v2  ;;  %599 = vmatpush.xpose.msk.msra.mxu0 %vm324_vm0, %v294_v2  ;;  %v280_v23 = vld [vmem:[%s844_s18] sm:$0xff]  ;;  %v425_v40 = vld [vmem:[%s990_s4 + $0x18] sm:$0xff]  ;;  %v424_v46 = vld [vmem:[%s990_s4 + $0x10] sm:$0xff] }
  0x1f   : > { %v296_v25 = vld [vmem:[%s987_s1] sm:$0xff]  ;;  %443 = vperm.xlu2 %683, %v425_v40   ;;  %v419_v47 = vld [vmem:[%s989_s3 + $0x8] sm:$0xff]  ;;  %v420_v49 = vld [vmem:[%s989_s3 + $0x10] sm:$0xff]  ;;  %p703_p13 = pneg %p702_p12 }
  0x20   : > { %316 = vperm.xlu0 %681, %v302_v17   ;;  %306 = vperm.xlu1 %682, %v300_v18   ;;  %v418_v45 = vld [vmem:[%s989_s3] sm:$0xff]  ;;  %v421_v50 = vld [vmem:[%s989_s3 + $0x18] sm:$0xff] }
  0x21   : > { %v493_v48 = vld [vmem:[#allocation2] sm:$0x1]  ;;  %p708_p3 = pnand %p707_p2, %p703_p13 }
  0x22   : > { %627 = vmatpush.xpose.msk.msra.mxu3 %vm324_vm0, %v293_v3  ;;  %600 = vmatpush.xpose.msk.msra.mxu0 %vm324_vm0, %v293_v3  ;;  %v492_v3 = vld [vmem:[%s991_s5] sm:$0x1] }
  0x26   : > { %628 = vmatpush.xpose.msk.msra.mxu3 %vm324_vm0, %v292_v4  ;;  %601 = vmatpush.xpose.msk.msra.mxu0 %vm324_vm0, %v292_v4 }
  0x27   : > { %438 = vperm.xlu2 %683, %v424_v46  }
  0x28   : > { %433 = vperm.xlu0 %681, %v423_v21   ;;  %428 = vperm.xlu1 %682, %v422_v22  }
  0x2a   : > { %629 = vmatpush.xpose.msk.msra.mxu3 %vm324_vm0, %v291_v5  ;;  %602 = vmatpush.xpose.msk.msra.mxu0 %vm324_vm0, %v291_v5 }
  0x2e   : > { %630 = vmatpush.xpose.msk.msra.mxu3 %vm324_vm0, %v290_v6  ;;  %603 = vmatpush.xpose.msk.msra.mxu0 %vm324_vm0, %v290_v6 }
  0x2f   : > { %496 = vperm.xlu2 %683, %v493_v48  }
  0x32   : > { %631 = vmatpush.xpose.msk.msra.mxu3 %vm324_vm0, %v289_v7  ;;  %604 = vmatpush.xpose.msk.msra.mxu0 %vm324_vm0, %v289_v7 }
  0x36   : > { %632 = vmatpush.xpose.msk.msra.mxu3 %vm324_vm0, %v288_v8  ;;  %605 = vmatpush.xpose.msk.msra.mxu0 %vm324_vm0, %v288_v8 }
  0x3a   : > { %633 = vmatpush.xpose.msk.msra.mxu3 %vm324_vm0, %v287_v9  ;;  %606 = vmatpush.xpose.msk.msra.mxu0 %vm324_vm0, %v287_v9 }
  0x3e   : > { %634 = vmatpush.xpose.msk.msra.mxu3 %vm324_vm0, %v286_v10  ;;  %607 = vmatpush.xpose.msk.msra.mxu0 %vm324_vm0, %v286_v10 }
  0x42   : > { %635 = vmatpush.xpose.msk.msra.mxu3 %vm324_vm0, %v285_v11  ;;  %608 = vmatpush.xpose.msk.msra.mxu0 %vm324_vm0, %v285_v11 }
  0x46   : > { %636 = vmatpush.xpose.msk.msra.mxu3 %vm324_vm0, %v284_v14  ;;  %609 = vmatpush.xpose.msk.msra.mxu0 %vm324_vm0, %v284_v14 }
  0x4a   : > { %637 = vmatpush.xpose.msk.msra.mxu3 %vm324_vm0, %v283_v16  ;;  %610 = vmatpush.xpose.msk.msra.mxu0 %vm324_vm0, %v283_v16 }
  0x4e   : > { %638 = vmatpush.xpose.msk.msra.mxu3 %vm324_vm0, %v282_v19  ;;  %611 = vmatpush.xpose.msk.msra.mxu0 %vm324_vm0, %v282_v19 }
  0x52   : > { %639 = vmatpush.xpose.msk.msra.mxu3 %vm324_vm0, %v281_v20  ;;  %612 = vmatpush.xpose.msk.msra.mxu0 %vm324_vm0, %v281_v20 }
  0x56   : > { %640 = vmatpush.xpose.msk.msra.mxu3 %vm324_vm0, %v280_v23  ;;  %613 = vmatpush.xpose.msk.msra.mxu0 %vm324_vm0, %v280_v23 }
  0x59   : > { %615 = vmatmul.msk.f32.vlgmr.msra.gmra.mxu3 %vm324_vm0, %v297_v24  ;;  %614 = vmatmul.msk.f32.vlgmr.msra.gmra.mxu0 %vm324_vm0, %v296_v25 }
  0x61   : > { %616 = vmatmul.msk.f32.gmra.mxu3 %vm324_vm0, %v298_v26 }
  0x69   : > { %617 = vmatmul.msk.f32.gmra.mxu3 %vm324_vm0, %v299_v27 }
  0x79   : > { %v444_v53 = vpop.permute.xlu2 %443 }
  0x81   : > { %v439_v55 = vpop.permute.xlu2 %438 }
  0x89   : > { %v497_v4 = vpop.permute.xlu2 %496 }
  0x8a   : > { %v322_v29 = vpop.permute.xlu0 %321  ;;  %v312_v31 = vpop.permute.xlu1 %311  ;;  %v499_v5 = vperm.slane %v497_v4, 0 }
  0x92   : > { %v317_v32 = vpop.permute.xlu0 %316  ;;  %v307_v39 = vpop.permute.xlu1 %306 }
  0x9a   : > { %v434_v59 = vpop.permute.xlu0 %433  ;;  %v429_v62 = vpop.permute.xlu1 %428 }
  0xd6   : > { %v402_v36 = vpop.f32.mrf.mxu0 }
  0xd7   : > { %v403_v42 = vadd.f32 %v402_v36, %v307_v39 }
  0xd9   : > { %v414_v44 = vmax.f32 %v403_v42, 0.0 }
  0xdc   : > { %v405_v28 = vpop.f32.mrf.mxu3 }
  0xdd   : > { %v406_v37 = vadd.f32 %v405_v28, %v312_v31 }
  0xdf   : > { %v415_v43 = vmax.f32 %v406_v37, 0.0 }
  0xe4   : > { %v408_v30 = vpop.f32.mrf.mxu3 }
  0xe5   : > { %v409_v34 = vadd.f32 %v408_v30, %v317_v32 }
  0xe7   : > { %v416_v41 = vmax.f32 %v409_v34, 0.0 }
  0xec   : > { %v411_v33 = vpop.f32.mrf.mxu3 }
  0xed   : > { %v412_v35 = vadd.f32 %v411_v33, %v322_v29 }
  0xef   : > { %v417_v38 = vmax.f32 %v412_v35, 0.0 }
  0xf1   : > { %471 = vmatpush.msra.mxu1 %v417_v38 }
  0xf3   : > { %472 = vmatpush.msra.mxu1 %v416_v41 }
  0xf5   : > { %473 = vmatpush.msra.mxu1 %v415_v43 }
  0xf7   : > { %474 = vmatpush.msra.mxu1 %v414_v44 }
  0xf8   : > { %618 = vmatmul.msk.f32.vlgmr.msra.gmra.mxu1 %vm446_vm1, %v418_v45 }
 0x100   : > { %619 = vmatmul.msk.f32.gmra.mxu1 %vm446_vm1, %v419_v47 }
 0x108   : > { %620 = vmatmul.msk.f32.gmra.mxu1 %vm446_vm1, %v420_v49 }
 0x110   : > { %621 = vmatmul.msk.f32.gmra.mxu1 %vm446_vm1, %v421_v50 }
 0x175   : > { %v476_v51 = vpop.f32.mrf.mxu1 }
 0x176   : > { %v477_v63 = vadd.f32 %v476_v51, %v429_v62 }
 0x178   : > { %v488_v2 = vmax.f32 %v477_v63, 0.0 }
 0x17d   : > { %v479_v52 = vpop.f32.mrf.mxu1 }
 0x17e   : > { %v480_v60 = vadd.f32 %v479_v52, %v434_v59 }
 0x180   : > { %v489_v1 = vmax.f32 %v480_v60, 0.0 }
 0x185   : > { %v482_v54 = vpop.f32.mrf.mxu1 }
 0x186   : > { %v483_v57 = vadd.f32 %v482_v54, %v439_v55 }
 0x188   : > { %v490_v0 = vmax.f32 %v483_v57, 0.0 }
 0x18d   : > { %v485_v56 = vpop.f32.mrf.mxu1 }
 0x18e   : > { %v486_v58 = vadd.f32 %v485_v56, %v444_v53 }
 0x190   : > { %v491_v61 = vmax.f32 %v486_v58, 0.0 }
 0x192   : > { %515 = vmatpush.msra.mxu2 %v491_v61 }
 0x194   : > { %516 = vmatpush.msra.mxu2 %v490_v0 }
 0x196   : > { %517 = vmatpush.msra.mxu2 %v489_v1 }
 0x198   : > { %518 = vmatpush.msra.mxu2 %v488_v2 }
 0x199   : > { %622 = vmatmul.msk.f32.vlgmr.msra.gmra.mxu2 %vm446_vm1, %v492_v3 }
 0x21c   : > { %v520_v6 = vpop.f32.mrf.mxu2 }
 0x21d   : > { %v521_v7 = vadd.f32 %v520_v6, %v499_v5 }
 0x21f   : > { %523 = vst [vmem:[%s273_s9] sm:$0x1] %v521_v7 }
 0x220   : > { %711 = shalt.err (!%p708_p3)
}
 0x221   : > { %641 = dma.vmem_to_hbm [thread:$0]  (%p830_p5), %s536_s10, 16, %s538_s14, %s525_s15  }
 0x222 PF: > { %p647_p4 = scmp.ge.s32.totalorder %s746_s29, 2  ;;  %s549_s22 = sand.u32 1, %s734_s26  }
 0x223   : > { %s550_s23 = scalar_lea.sflag [#allocation4], %s549_s22 }
 0x224   : > { %p644_p7 = pnand %p647_p4, %p834_p6 }
 0x226   : > { %p645_p8 = pneg %p644_p7 }
 0x228   : > { %729 = dma.done.wait (%p645_p8), %s550_s23, 16  }
 0x229   : > { %731 = vsyncadd (%p645_p8), %s550_s23, 4294967280  ;;  %p19_p9 = scmp.ge.s32.totalorder %s817_s8, 4   ;;  %s996_s26 = smov %s738_s27 }
 0x22a   : > { %s997_s27 = smov %s742_s28  ;;  %s998_s28 = smov %s828_s11 }
 0x22b   : > { %s999_s29 = smov %s817_s8  ;;  %21 = sbr.rel (!%p19_p9) target bundleno = 6 (0x6), region = 83 }
 0x230   :  { %555 = vsyncpa [#allocation4], 1 }
 0x231   :  { %557 = vsyncpa [#allocation4 + $0x1], 1 }

</bundles_post_ra>
